<compile_context>
chip_gen: v6e
topology: v6e:2x2x1
jax: 0.10.0
libtpu: 0.0.40
codegen_flags: <defaults>
</compile_context>

<pallas_src>
import jax
import jax.numpy as jnp
from jax.experimental import pallas as pl
from jax.experimental.pallas import tpu as pltpu


def _round_up(x: int, m: int) -> int:
    return ((x + m - 1) // m) * m


def _pick_tile(dim: int, max_tile: int, align: int) -> int:
    """Largest tile <= max_tile that is a multiple of `align` and divides `dim`
    (dim is already a multiple of `align`). Returns dim itself if small enough."""
    if dim <= max_tile:
        return dim
    t = (max_tile // align) * align
    while t > align:
        if dim % t == 0:
            return t
        t -= align
    return align


def _select_tiles(Mp, Kp, Np, in_bytes, out_bytes, needs_acc,
                  tm_max=512, tn_max=512, tk_max=512,
                  vmem_budget=20 * 1024 * 1024):
    """Pick (tm, tk, tn) dividing the aligned dims under a VMEM budget."""

    def footprint(tm, tk, tn):
        fp = 2 * (tm * tk + tk * tn) * in_bytes   # double-buffered operand tiles
        fp += 2 * tm * tn * out_bytes             # double-buffered output tile
        if needs_acc:
            fp += tm * tn * 4                     # f32 accumulator scratch
        return fp

    tm = _pick_tile(Mp, tm_max, 8)

    # Resident-weight fast path: pass the whole (Kp, Np) weight as one block.
    # Its block index is constant across the grid, so Pallas DMAs it from HBM
    # exactly once (vs. once per M-tile with a (k, j) index map).
    tm_res = tm
    while footprint(tm_res, Kp, Np) > vmem_budget and tm_res > 128 and tm_res % 16 == 0:
        tm_res //= 2
    if footprint(tm_res, Kp, Np) <= vmem_budget:
        return tm_res, Kp, Np

    # General tiled path.
    tk = _pick_tile(Kp, tk_max, 128)
    tn = _pick_tile(Np, tn_max, 128)
    while footprint(tm, tk, tn) > vmem_budget and tk > 128 and tk % 256 == 0:
        tk //= 2
    while footprint(tm, tk, tn) > vmem_budget and tm > 8 and tm % 16 == 0:
        tm //= 2
    return tm, tk, tn


def _matmul_kernel_f32out(x_ref, w_ref, o_ref):
    # f32 output: accumulate directly into the (VMEM-resident) output block.
    @pl.when(pl.program_id(2) == 0)
    def _init():
        o_ref[...] = jnp.zeros_like(o_ref)

    o_ref[...] += jnp.dot(
        x_ref[...], w_ref[...], preferred_element_type=jnp.float32
    )


def _matmul_kernel_acc(x_ref, w_ref, o_ref, acc_ref):
    # Non-f32 output: accumulate in an f32 scratch, cast on the final K step.
    @pl.when(pl.program_id(2) == 0)
    def _init():
        acc_ref[...] = jnp.zeros_like(acc_ref)

    acc_ref[...] += jnp.dot(
        x_ref[...], w_ref[...], preferred_element_type=jnp.float32
    )

    @pl.when(pl.program_id(2) == pl.num_programs(2) - 1)
    def _flush():
        o_ref[...] = acc_ref[...].astype(o_ref.dtype)


def key_forward(x, weight, *, cast_inputs_to_bf16=False,
                tm_max=512, tn_max=512, tk_max=512):
    """x: (..., dim_input), weight: (dim_attn, dim_input) -> (..., dim_attn)."""
    dim_attn, dim_input = weight.shape
    orig_shape = x.shape
    assert orig_shape[-1] == dim_input

    out_dtype = x.dtype
    x2d = x.reshape(-1, dim_input)            # (M, K)
    wt = weight.T                             # (K, N): one-time wrapper transpose

    if cast_inputs_to_bf16:
        # bf16 operands for the bf16-native MXU; accumulation stays f32 below.
        x2d = x2d.astype(jnp.bfloat16)
        wt = wt.astype(jnp.bfloat16)

    M, K = x2d.shape
    N = dim_attn

    # Align only to the (8, 128) layout requirement; no round-up to tile size.
    Mp = _round_up(M, 8)
    Kp = _round_up(K, 128)
    Np = _round_up(N, 128)

    if (Mp, Kp) != (M, K):
        x2d = jnp.pad(x2d, ((0, Mp - M), (0, Kp - K)))
    if (Kp, Np) != (K, N):
        wt = jnp.pad(wt, ((0, Kp - K), (0, Np - N)))

    in_bytes = x2d.dtype.itemsize
    out_bytes = out_dtype.itemsize
    needs_acc = out_dtype != jnp.float32

    tm, tk, tn = _select_tiles(Mp, Kp, Np, in_bytes, out_bytes, needs_acc,
                               tm_max=tm_max, tn_max=tn_max, tk_max=tk_max)

    # Feed both v7x TensorCores: make sure there are >= 2 "parallel" blocks
    # when the M dimension allows it (halving tm preserves divisibility).
    while (Mp // tm) * (Np // tn) < 2 and tm >= 16 and tm % 16 == 0:
        tm //= 2

    grid = (Mp // tm, Np // tn, Kp // tk)

    if needs_acc:
        kernel = _matmul_kernel_acc
        scratch = [pltpu.VMEM((tm, tn), jnp.float32)]
    else:
        kernel = _matmul_kernel_f32out
        scratch = []

    out = pl.pallas_call(
        kernel,
        out_shape=jax.ShapeDtypeStruct((Mp, Np), out_dtype),
        grid=grid,
        in_specs=[
            pl.BlockSpec((tm, tk), lambda i, j, k: (i, k)),  # x tile (M, K)
            pl.BlockSpec((tk, tn), lambda i, j, k: (k, j)),  # weight tile (K, N)
        ],
        out_specs=pl.BlockSpec((tm, tn), lambda i, j, k: (i, j)),
        scratch_shapes=scratch,
        compiler_params=pltpu.CompilerParams(
            dimension_semantics=("parallel", "parallel", "arbitrary"),
            vmem_limit_bytes=32 * 1024 * 1024,
        ),
    )(x2d, wt)

    if (Mp, Np) != (M, N):
        out = out[:M, :N]
    return out.reshape(*orig_shape[:-1], dim_attn)


if __name__ == "__main__":
    # Small shapes consistent with the module:
    # (batch, seq, dim_input) -> (batch, seq, dim_attn)
    batch, seq, dim_input, dim_attn = 2, 8, 32, 64

    key = jax.random.PRNGKey(0)
    kx, kw = jax.random.split(key)
    x = jax.random.normal(kx, (batch, seq, dim_input), dtype=jnp.float32)
    # Deterministic init for fc1.weight (shape (dim_attn, dim_input)),
    # mimicking nn.Linear's uniform(-1/sqrt(fan_in), 1/sqrt(fan_in)) init.
    bound = 1.0 / (dim_input ** 0.5)
    weight = jax.random.uniform(
        kw, (dim_attn, dim_input), dtype=jnp.float32, minval=-bound, maxval=bound
    )

    # Plain-JAX reference (x @ W^T).
    ref = jnp.einsum("bsk,nk->bsn", x, weight)

    # Default path: f32 operands, matches the PyTorch module's numerics.
    out = jax.block_until_ready(jax.jit(key_forward)(x, weight))
    assert out.shape == (batch, seq, dim_attn)
    assert jnp.allclose(out, ref, atol=1e-5, rtol=1e-5)

    # bf16-operand fast path (f32 accumulation) for the bf16-native MXUs.
    out_bf16 = jax.block_until_ready(
        jax.jit(lambda a, b: key_forward(a, b, cast_inputs_to_bf16=True))(x, weight)
    )
    assert out_bf16.shape == (batch, seq, dim_attn)
    assert jnp.allclose(out_bf16, ref, atol=5e-2, rtol=5e-2)

    print("KERNEL_OK")
</pallas_src>

<mosaic_0001>
module attributes {stable_mosaic.version = 11 : i64} {
  func.func @_matmul_kernel_f32out(%arg0: i32, %arg1: i32, %arg2: i32, %arg3: memref<8x128xf32, #tpu.memory_space<vmem>>, %arg4: memref<128x128xf32, #tpu.memory_space<vmem>>, %arg5: memref<8x128xf32, #tpu.memory_space<vmem>>) attributes {dimension_semantics = [#tpu.dimension_semantics<parallel>, #tpu.dimension_semantics<parallel>, #tpu.dimension_semantics<arbitrary>], iteration_bounds = array<i64: 2, 1, 1>, scalar_prefetch = 0 : i64, scratch_operands = 0 : i64, tpu.core_type = #tpu.core_type<tc>, window_params = [{transform_indices = @transform_0, window_bounds = array<i64: 8, 128>}, {transform_indices = @transform_1, window_bounds = array<i64: 128, 128>}, {transform_indices = @transform_2, window_bounds = array<i64: 8, 128>}]} {
    %c0_i32 = arith.constant 0 : i32
    %0 = arith.cmpi eq, %arg2, %c0_i32 : i32
    %1 = arith.extui %0 : i1 to i32
    %c0_i32_0 = arith.constant 0 : i32
    %2 = arith.cmpi ne, %1, %c0_i32_0 : i32
    scf.if %2 {
      %cst_8 = arith.constant 0.000000e+00 : f32
      %9 = vector.broadcast %cst_8 : f32 to vector<8x128xf32>
      %c0_9 = arith.constant 0 : index
      %c0_10 = arith.constant 0 : index
      %10 = vector.load %arg5[%c0_9, %c0_10] : memref<8x128xf32, #tpu.memory_space<vmem>>, vector<8x128xf32>
      tpu.vector_store %arg5[%c0_9, %c0_10], %9 {strides = array<i32>} : memref<8x128xf32, #tpu.memory_space<vmem>>, vector<8x128xf32>,
    } else {
    }
    %c0 = arith.constant 0 : index
    %c0_1 = arith.constant 0 : index
    %3 = vector.load %arg5[%c0, %c0_1] : memref<8x128xf32, #tpu.memory_space<vmem>>, vector<8x128xf32>
    %c0_2 = arith.constant 0 : index
    %c0_3 = arith.constant 0 : index
    %4 = vector.load %arg3[%c0_2, %c0_3] : memref<8x128xf32, #tpu.memory_space<vmem>>, vector<8x128xf32>
    %c0_4 = arith.constant 0 : index
    %c0_5 = arith.constant 0 : index
    %5 = vector.load %arg4[%c0_4, %c0_5] : memref<128x128xf32, #tpu.memory_space<vmem>>, vector<128x128xf32>
    %cst = arith.constant dense<0.000000e+00> : vector<8x128xf32>
    %6 = tpu.matmul %4, %5, %cst {dimension_numbers = #tpu.dot_dimension_numbers<[1], [0], [0], [1], [0, 0, 1, 1], [], []>} : vector<8x128xf32>, vector<128x128xf32>, vector<8x128xf32> -> vector<8x128xf32>
    %7 = arith.addf %3, %6 : vector<8x128xf32>
    %c0_6 = arith.constant 0 : index
    %c0_7 = arith.constant 0 : index
    %8 = vector.load %arg5[%c0_6, %c0_7] : memref<8x128xf32, #tpu.memory_space<vmem>>, vector<8x128xf32>
    tpu.vector_store %arg5[%c0_6, %c0_7], %7 {strides = array<i32>} : memref<8x128xf32, #tpu.memory_space<vmem>>, vector<8x128xf32>,
    return
  }
  func.func @transform_0(%arg0: i32, %arg1: i32, %arg2: i32) -> (i32, i32) {
    %c0_i32 = arith.constant 0 : i32
    return %arg0, %arg2 : i32, i32
  }
  func.func @transform_1(%arg0: i32, %arg1: i32, %arg2: i32) -> (i32, i32) {
    %c0_i32 = arith.constant 0 : i32
    return %arg2, %arg1 : i32, i32
  }
  func.func @transform_2(%arg0: i32, %arg1: i32, %arg2: i32) -> (i32, i32) {
    %c0_i32 = arith.constant 0 : i32
    return %arg0, %arg1 : i32, i32
  }
}

</mosaic_0001>

<bundles_post_ra>
// kernel: key_forward.1
= control target key start
LH: loop header
LB: loop body
LE: loop exit
PB: predicated region body
PF: predicated region fallthrough
CT: control target
= control target key end

     0   :  { %s530_s9 = smov 0   ;;  %s532_s10 = smov 0   ;;  %s615_s0 = inlined_call_operand.vmem [shape: f32[16,128], index: 0, kind: input, shape index: {}]   ;;  %s616_s1 = inlined_call_operand.vmem [shape: f32[128,128], index: 1, kind: input, shape index: {}]   ;;  %s617_s2 = inlined_call_operand.vmem [shape: f32[16,128], index: 2, kind: output, shape index: {}]  }
   0x1   :  { %s534_s11 = smov 0  }
   0x2 LB: > { %s31_s12 = sadd.s32 1, %s507_s10  ;;  %p406_p0 = scmp.ge.s32.totalorder %s511_s11, 1  ;;  %s511_s11 = sphi %s534_s11, %s12_s11   ;;  %s507_s10 = sphi %s532_s10, %s619_s10   ;;  %s503_s9 = sphi %s530_s9, %s618_s9  }
   0x3   : > { %p33_p1 = scmp.ge.s32.totalorder %s31_s12, 2  ;;  %p153_p2 = scmp.lt.s32.totalorder %s511_s11, 3 }
   0x5   : > { %s621_s12 = smov (%p33_p1, %s31_s12), 0  ;;  %p154_p3 = pnand %p406_p0, %p153_p2 }
   0x6   : > { %p187_p4 = scmp.lt.s32.totalorder (!%p154_p3), %s503_s9, 1 }
   0x7   : > { %157 = sbr.rel (%p154_p3) target bundleno = 240 (0xf0), region = 28 }
   0xc   : > { %v232_v0 = vld [vmem:[%s616_s1 + $0x78] sm:$0xff]  ;;  %v513_v1 = vmov 0.0   ;;  %v231_v2 = vld [vmem:[%s616_s1 + $0x70] sm:$0xff]  ;;  %vm514_vm0 = vmmov 0   ;;  %v230_v3 = vld [vmem:[%s616_s1 + $0x68] sm:$0xff]  ;;  %s623_s9 = smov (!%p187_p4, %s503_s9), 1 }
   0xd   : > { %428 = vmatprep.subr.mxu0 %v513_v1  ;;  %460 = vmatprep.mubr.msk.f32.mxu0 %vm514_vm0, %v513_v1  ;;  %v229_v4 = vld [vmem:[%s616_s1 + $0x60] sm:$0xff]  ;;  %v228_v5 = vld [vmem:[%s616_s1 + $0x58] sm:$0xff]  ;;  %v227_v6 = vld [vmem:[%s616_s1 + $0x50] sm:$0xff]  ;;  %s407_s15 = sshll.u32 %s623_s9, 3 }
   0xe   : > { %429 = vmatpush3.msra.mxu0 %v232_v0  ;;  %v226_v7 = vld [vmem:[%s616_s1 + $0x48] sm:$0xff]  ;;  %v225_v8 = vld [vmem:[%s616_s1 + $0x40] sm:$0xff]  ;;  %v224_v9 = vld [vmem:[%s616_s1 + $0x38] sm:$0xff]  ;;  %s193_s22 = scalar_lea.vmem %s615_s0, %s407_s15  ;;  %s209_s26 = scalar_lea.vmem %s617_s2, %s407_s15 }
   0xf   : > { %430 = vmatprep.subr.mxu0 %v513_v1  ;;  %v223_v10 = vld [vmem:[%s616_s1 + $0x30] sm:$0xff]  ;;  %v222_v11 = vld [vmem:[%s616_s1 + $0x28] sm:$0xff]  ;;  %v221_v12 = vld [vmem:[%s616_s1 + $0x20] sm:$0xff] }
  0x10   : > { %431 = vmatpush3.msra.mxu0 %v231_v2  ;;  %v220_v13 = vld [vmem:[%s616_s1 + $0x18] sm:$0xff]  ;;  %v219_v14 = vld [vmem:[%s616_s1 + $0x10] sm:$0xff]  ;;  %v218_v15 = vld [vmem:[%s616_s1 + $0x8] sm:$0xff] }
  0x11   : > { %432 = vmatprep.subr.mxu0 %v513_v1  ;;  %v217_v16 = vld [vmem:[%s616_s1] sm:$0xff] }
  0x12   : > { %433 = vmatpush3.msra.mxu0 %v230_v3  ;;  %v216_v17 = vld [vmem:[%s193_s22] sm:$0xff] }
  0x13   : > { %434 = vmatprep.subr.mxu0 %v513_v1 }
  0x14   : > { %435 = vmatpush3.msra.mxu0 %v229_v4 }
  0x15   : > { %436 = vmatprep.subr.mxu0 %v513_v1 }
  0x16   : > { %437 = vmatpush3.msra.mxu0 %v228_v5 }
  0x17   : > { %438 = vmatprep.subr.mxu0 %v513_v1 }
  0x18   : > { %439 = vmatpush3.msra.mxu0 %v227_v6 }
  0x19   : > { %440 = vmatprep.subr.mxu0 %v513_v1 }
  0x1a   : > { %441 = vmatpush3.msra.mxu0 %v226_v7 }
  0x1b   : > { %442 = vmatprep.subr.mxu0 %v513_v1 }
  0x1c   : > { %443 = vmatpush3.msra.mxu0 %v225_v8 }
  0x1d   : > { %444 = vmatprep.subr.mxu0 %v513_v1 }
  0x1e   : > { %445 = vmatpush3.msra.mxu0 %v224_v9 }
  0x1f   : > { %446 = vmatprep.subr.mxu0 %v513_v1 }
  0x20   : > { %447 = vmatpush3.msra.mxu0 %v223_v10 }
  0x21   : > { %448 = vmatprep.subr.mxu0 %v513_v1 }
  0x22   : > { %449 = vmatpush3.msra.mxu0 %v222_v11 }
  0x23   : > { %450 = vmatprep.subr.mxu0 %v513_v1 }
  0x24   : > { %451 = vmatpush3.msra.mxu0 %v221_v12 }
  0x25   : > { %452 = vmatprep.subr.mxu0 %v513_v1 }
  0x26   : > { %453 = vmatpush3.msra.mxu0 %v220_v13 }
  0x27   : > { %454 = vmatprep.subr.mxu0 %v513_v1 }
  0x28   : > { %455 = vmatpush3.msra.mxu0 %v219_v14 }
  0x29   : > { %456 = vmatprep.subr.mxu0 %v513_v1 }
  0x2a   : > { %457 = vmatpush3.msra.mxu0 %v218_v15 }
  0x2b   : > { %458 = vmatprep.subr.mxu0 %v513_v1 }
  0x2c   : > { %459 = vmatpush3.msra.mxu0 %v217_v16 }
  0x2d   : > { %461 = vmatmul.mubr.f32.vlgmr.msra.gmra.mxu0 %v216_v17 }
  0xed   : > { %v299_v18 = vpop.f32.mrf.mxu0 }
  0xee   : > { %304 = vst [vmem:[%s209_s26] sm:$0xff] %v299_v18 }
  0xef   : > { %v462_v19 = vpop.f32.mrf.mxu0 }
  0xf0 PF: > { %s12_s11 = sadd.s32 1, %s511_s11   ;;  %s618_s9 = smov %s507_s10 }
  0xf1   : > { %p9_p5 = scmp.ge.s32.totalorder %s12_s11, 4   ;;  %s619_s10 = smov %s621_s12 }
  0xf3   :  { %11 = sbr.rel (!%p9_p5) target bundleno = 2 (0x2), region = 65 }

</bundles_post_ra>
